<compile_context>
chip_gen: v6e
topology: v6e:2x2x1
jax: 0.10.0
libtpu: 0.0.40
codegen_flags: <defaults>
</compile_context>

<pallas_src>
import functools

import jax
import jax.numpy as jnp
from jax import lax
from jax.experimental import pallas as pl
from jax.experimental.pallas import tpu as pltpu

DELTA = 1.0
DEFAULT_BLOCK_B = 8192
_VMEM_LIMIT_BYTES = 32 * 1024 * 1024  # explicit: > v5e 16 MiB default, <= v7x 64 MiB/TC


def _ndnf_kernel(x_ref, wc_ref, wd_ref, cbias_ref, dbias_ref, out_ref):
    # x_ref    : (TB, F) caller dtype (f32 ok) -- batch tile, double-buffered DMA
    # wc_ref   : (C, F)  bf16 -- conjunction weights, VMEM-resident across steps
    # wd_ref   : (1, C)  f32  -- disjunction weights, VMEM-resident across steps
    # cbias_ref: (1, C)  f32  -- delta*(max|Wc| - sum|Wc|), precomputed in wrapper
    # dbias_ref: (1, 1)  f32  -- delta*(sum|Wd| - max|Wd|), precomputed in wrapper
    # out_ref  : (1, TB) f32  -- lane-dense output row for this batch tile

    # Cast x to bf16 on the VPU (free under the tile DMA); symbolic +/-1 inputs
    # are exact in bf16. General float features lose <0.4% precision here.
    x = x_ref[...].astype(jnp.bfloat16)

    # --- conjunction SemiSymbolic: x @ Wc^T + delta*(max|Wc| - sum|Wc|) ---
    # dot_general contracting the last axes of both operands: no (C,F) transpose
    # before the MXU push; bf16 operands, f32 accumulation.
    conj = lax.dot_general(
        x, wc_ref[...],
        dimension_numbers=(((1,), (1,)), ((), ())),
        preferred_element_type=jnp.float32,
    )                                                  # (TB, C) f32
    conj = conj + cbias_ref[...]                       # (1, C) broadcast, exact f32 bias

    t = jnp.tanh(conj)                                 # (TB, C) f32 (EUP)

    # --- disjunction SemiSymbolic: t @ Wd^T + delta*(sum|Wd| - max|Wd|) ---
    # n_out == 1: VPU broadcast-multiply + XLU lane reduction, emitted as a
    # lane-dense (1, TB) row (unmasked wide vst). MXU alternative only if the
    # XLU slot ever becomes the binding unit.
    row = jnp.sum(t * wd_ref[...], axis=-1)            # (TB,)
    out_ref[...] = (row[None, :] + dbias_ref[...]).astype(out_ref.dtype)


def _pick_batch_tile(B, block_b):
    """Batch tile: multiple of 128, capped so grid >= 2 whenever B > 128."""
    if B <= 128:
        return B                                    # tiny batch: single full-extent tile
    cap = ((-(-B // 2)) + 127) // 128 * 128         # round_up(cdiv(B,2), 128) -> >=2 tiles
    req = max(128, (block_b // 128) * 128)
    return min(req, cap)


def mushroom_neural_dnf_forward(x, conj_w, disj_w, *, delta=DELTA,
                                block_b=DEFAULT_BLOCK_B):
    """NeuralDNF forward.  x: (B, F); conj_w: (C, F); disj_w: (1, C) -> (B, 1) f32."""
    B, F = x.shape
    C = conj_w.shape[0]
    assert conj_w.shape == (C, F)
    assert disj_w.shape == (1, C)

    conj_w_f32 = conj_w.astype(jnp.float32)
    disj_w_f32 = disj_w.astype(jnp.float32)

    # Exact f32 |w| bias math, hoisted out of the grid loop (O(C*F), done once).
    abs_wc = jnp.abs(conj_w_f32)
    conj_bias = (delta * (abs_wc.max(axis=1) - abs_wc.sum(axis=1)))[None, :]   # (1, C)
    abs_wd = jnp.abs(disj_w_f32)
    disj_bias = (delta * (abs_wd.sum(axis=1) - abs_wd.max(axis=1)))[None, :]   # (1, 1)

    wc_bf16 = conj_w_f32.astype(jnp.bfloat16)          # MXU operand, cast once

    tb = _pick_batch_tile(B, block_b)
    grid = (pl.cdiv(B, tb),)

    itemsize = jnp.dtype(x.dtype).itemsize
    cost = pl.CostEstimate(
        flops=2 * B * C * F + 2 * B * C,
        transcendentals=B * C,
        bytes_accessed=B * F * itemsize + 4 * B + 2 * C * F + 4 * C,
    )

    out_row = pl.pallas_call(
        _ndnf_kernel,
        out_shape=jax.ShapeDtypeStruct((1, B), jnp.float32),
        grid=grid,
        in_specs=[
            pl.BlockSpec((tb, F), lambda i: (i, 0)),     # batch tile of x (native dtype)
            pl.BlockSpec((C, F), lambda i: (0, 0)),      # weights VMEM-resident
            pl.BlockSpec((1, C), lambda i: (0, 0)),
            pl.BlockSpec((1, C), lambda i: (0, 0)),      # precomputed conj bias
            pl.BlockSpec((1, 1), lambda i: (0, 0)),      # precomputed disj bias
        ],
        out_specs=pl.BlockSpec((1, tb), lambda i: (0, i)),   # lane-dense output row
        compiler_params=pltpu.CompilerParams(
            dimension_semantics=("parallel",),    # shard batch tiles across v7x TCs
            vmem_limit_bytes=_VMEM_LIMIT_BYTES,   # big tile still fits v5e / v7x
        ),
        cost_estimate=cost,
    )(x, wc_bf16, disj_w_f32, conj_bias, disj_bias)
    return out_row.reshape(B, 1)


def reference_forward(x, conj_w, disj_w, delta=DELTA):
    """Pure-JAX f32 reference of the NeuralDNF forward (for correctness check)."""
    abs_wc = jnp.abs(conj_w)
    conj_bias = delta * (abs_wc.max(axis=1) - abs_wc.sum(axis=1))
    conj = x @ conj_w.T + conj_bias[None, :]
    t = jnp.tanh(conj)
    abs_wd = jnp.abs(disj_w)
    disj_bias = delta * (abs_wd.sum(axis=1) - abs_wd.max(axis=1))
    return t @ disj_w.T + disj_bias[None, :]


# TODO(synk): get_weight_reg_loss (training-time regularizer) is not part of the
# forward pass and is not implemented here.

if __name__ == "__main__":
    # MushroomNeuralDNF(num_features=112, num_conjunctions=64), batch of 256.
    batch = 256
    num_features = 112
    num_conjunctions = 64

    key = jax.random.PRNGKey(0)
    kx, kc, kd = jax.random.split(key, 3)

    # Symbolic +/-1 inputs (exact in bf16).
    x = jnp.sign(jax.random.normal(kx, (batch, num_features), dtype=jnp.float32))
    x = jnp.where(x == 0, 1.0, x)

    conj_w = 0.1 * jax.random.normal(
        kc, (num_conjunctions, num_features), dtype=jnp.float32
    )
    disj_w = 0.1 * jax.random.normal(kd, (1, num_conjunctions), dtype=jnp.float32)

    # Case 1: B a multiple of the tile -> grid of 2 full tiles (>=2-tile path).
    out = jax.block_until_ready(mushroom_neural_dnf_forward(x, conj_w, disj_w))
    ref = reference_forward(x, conj_w, disj_w)
    assert out.shape == (batch, 1)
    # bf16 MXU operands vs f32 reference -> slightly loosened tolerance.
    assert jnp.allclose(out, ref, atol=3e-2, rtol=3e-2), (out, ref)

    # Case 2: B not a multiple of the tile -> exercises the partial edge tile
    # (padded rows must only land in discarded output lanes).
    b2 = 200
    out2 = jax.block_until_ready(mushroom_neural_dnf_forward(x[:b2], conj_w, disj_w))
    ref2 = reference_forward(x[:b2], conj_w, disj_w)
    assert out2.shape == (b2, 1)
    assert jnp.allclose(out2, ref2, atol=3e-2, rtol=3e-2), (out2, ref2)

    print("KERNEL_OK")
</pallas_src>

<mosaic_0001>
module attributes {stable_mosaic.version = 11 : i64} {
  func.func @_ndnf_kernel(%arg0: i32, %arg1: memref<128x112xf32, #tpu.memory_space<vmem>>, %arg2: memref<64x112xbf16, #tpu.memory_space<vmem>>, %arg3: memref<1x64xf32, #tpu.memory_space<vmem>>, %arg4: memref<1x64xf32, #tpu.memory_space<vmem>>, %arg5: memref<1x1xf32, #tpu.memory_space<vmem>>, %arg6: memref<1x128xf32, #tpu.memory_space<vmem>>) attributes {dimension_semantics = [#tpu.dimension_semantics<parallel>], iteration_bounds = array<i64: 2>, scalar_prefetch = 0 : i64, scratch_operands = 0 : i64, tpu.core_type = #tpu.core_type<tc>, window_params = [{transform_indices = @transform_0, window_bounds = array<i64: 128, 112>}, {pipeline_mode = #tpu.pipeline_mode<synchronous>, transform_indices = @transform_1, window_bounds = array<i64: 64, 112>}, {pipeline_mode = #tpu.pipeline_mode<synchronous>, transform_indices = @transform_2, window_bounds = array<i64: 1, 64>}, {pipeline_mode = #tpu.pipeline_mode<synchronous>, transform_indices = @transform_3, window_bounds = array<i64: 1, 64>}, {pipeline_mode = #tpu.pipeline_mode<synchronous>, transform_indices = @transform_4, window_bounds = array<i64: 1, 1>}, {transform_indices = @transform_5, window_bounds = array<i64: 1, 128>}]} {
    %c0 = arith.constant 0 : index
    %c0_0 = arith.constant 0 : index
    %0 = vector.load %arg1[%c0, %c0_0] : memref<128x112xf32, #tpu.memory_space<vmem>>, vector<128x112xf32>
    %1 = arith.truncf %0 : vector<128x112xf32> to vector<128x112xbf16>
    %c0_1 = arith.constant 0 : index
    %c0_2 = arith.constant 0 : index
    %2 = vector.load %arg2[%c0_1, %c0_2] : memref<64x112xbf16, #tpu.memory_space<vmem>>, vector<64x112xbf16>
    %cst = arith.constant dense<0.000000e+00> : vector<128x64xf32>
    %3 = tpu.matmul %1, %2, %cst {dimension_numbers = #tpu.dot_dimension_numbers<[1], [1], [0], [0], [0, 0, 1, 0], [], []>} : vector<128x112xbf16>, vector<64x112xbf16>, vector<128x64xf32> -> vector<128x64xf32>
    %c0_3 = arith.constant 0 : index
    %c0_4 = arith.constant 0 : index
    %4 = vector.load %arg4[%c0_3, %c0_4] : memref<1x64xf32, #tpu.memory_space<vmem>>, vector<1x64xf32>
    %5 = vector.broadcast %4 : vector<1x64xf32> to vector<128x64xf32>
    %6 = arith.addf %3, %5 : vector<128x64xf32>
    %7 = math.tanh %6 : vector<128x64xf32>
    %c0_5 = arith.constant 0 : index
    %c0_6 = arith.constant 0 : index
    %8 = vector.load %arg3[%c0_5, %c0_6] : memref<1x64xf32, #tpu.memory_space<vmem>>, vector<1x64xf32>
    %9 = vector.broadcast %8 : vector<1x64xf32> to vector<128x64xf32>
    %10 = arith.mulf %7, %9 : vector<128x64xf32>
    %cst_7 = arith.constant dense<0.000000e+00> : vector<128xf32>
    %11 = vector.multi_reduction <add>, %10, %cst_7 [1] : vector<128x64xf32> to vector<128xf32>
    %12 = vector.shape_cast %11 : vector<128xf32> to vector<1x128xf32>
    %c0_8 = arith.constant 0 : index
    %c0_9 = arith.constant 0 : index
    %13 = vector.load %arg5[%c0_8, %c0_9] : memref<1x1xf32, #tpu.memory_space<vmem>>, vector<1x1xf32>
    %14 = vector.broadcast %13 : vector<1x1xf32> to vector<1x128xf32>
    %15 = arith.addf %12, %14 : vector<1x128xf32>
    %c0_10 = arith.constant 0 : index
    %c0_11 = arith.constant 0 : index
    %16 = vector.load %arg6[%c0_10, %c0_11] : memref<1x128xf32, #tpu.memory_space<vmem>>, vector<1x128xf32>
    tpu.vector_store %arg6[%c0_10, %c0_11], %15 {strides = array<i32>} : memref<1x128xf32, #tpu.memory_space<vmem>>, vector<1x128xf32>,
    return
  }
  func.func @transform_0(%arg0: i32) -> (i32, i32) {
    %c0_i32 = arith.constant 0 : i32
    %c0_i32_0 = arith.constant 0 : i32
    return %arg0, %c0_i32 : i32, i32
  }
  func.func @transform_1(%arg0: i32) -> (i32, i32) {
    %c0_i32 = arith.constant 0 : i32
    %c0_i32_0 = arith.constant 0 : i32
    %c0_i32_1 = arith.constant 0 : i32
    return %c0_i32, %c0_i32_0 : i32, i32
  }
  func.func @transform_2(%arg0: i32) -> (i32, i32) {
    %c0_i32 = arith.constant 0 : i32
    %c0_i32_0 = arith.constant 0 : i32
    %c0_i32_1 = arith.constant 0 : i32
    return %c0_i32, %c0_i32_0 : i32, i32
  }
  func.func @transform_3(%arg0: i32) -> (i32, i32) {
    %c0_i32 = arith.constant 0 : i32
    %c0_i32_0 = arith.constant 0 : i32
    %c0_i32_1 = arith.constant 0 : i32
    return %c0_i32, %c0_i32_0 : i32, i32
  }
  func.func @transform_4(%arg0: i32) -> (i32, i32) {
    %c0_i32 = arith.constant 0 : i32
    %c0_i32_0 = arith.constant 0 : i32
    %c0_i32_1 = arith.constant 0 : i32
    return %c0_i32, %c0_i32_0 : i32, i32
  }
  func.func @transform_5(%arg0: i32) -> (i32, i32) {
    %c0_i32 = arith.constant 0 : i32
    %c0_i32_0 = arith.constant 0 : i32
    return %c0_i32, %arg0 : i32, i32
  }
}

</mosaic_0001>

<bundles_post_ra>
// kernel: tpu_custom_call.1
= control target key start
LH: loop header
LB: loop body
LE: loop exit
PB: predicated region body
PF: predicated region fallthrough
CT: control target
= control target key end

     0   :  { %s1241_s0 = inlined_call_operand.vmem [shape: f32[256,112], index: 0, kind: input, shape index: {}]   ;;  %s1242_s1 = inlined_call_operand.vmem [shape: bf16[64,112], index: 1, kind: input, shape index: {}]   ;;  %s1243_s2 = inlined_call_operand.vmem [shape: f32[1,64], index: 2, kind: input, shape index: {}]   ;;  %s1244_s3 = inlined_call_operand.vmem [shape: f32[1,64], index: 3, kind: input, shape index: {}]   ;;  %s1245_s4 = inlined_call_operand.<no memory space> [shape: f32[1,1], index: 4, kind: input, shape index: {}]   ;;  %s1246_s5 = inlined_call_operand.hbm [shape: f32[1,256], index: 5, kind: output, shape index: {}]  }
   0x1   :  { %v10_v0 = vstv %s1245_s4 }
   0x2   :  { %11 = vst [vmem:[#allocation2] sm:$0x1] %v10_v0 }
   0x3   :  { %12 = vsyncpa [#allocation4], 0 }
   0x4   :  { %14 = vsyncpa [#allocation4 + $0x1], 0  ;;  %s981_s20 = smov 0   ;;  %s983_s21 = smov 0  }
   0x5   :  { %s985_s22 = smov 0   ;;  %s987_s23 = smov 0  }
   0x6 LB: > { %s730_s4 = sadd.s32 4294967295, %s944_s23   ;;  %s731_s24 = sadd.s32 4294967294, %s944_s23   ;;  %s944_s23 = sphi %s987_s23, %s1252_s23   ;;  %s940_s22 = sphi %s985_s22, %s1251_s22   ;;  %s936_s21 = sphi %s983_s21, %s1250_s21   ;;  %s932_s20 = sphi %s981_s20, %s1249_s20  }
   0x7   : > { %s1004_s25 = sadd.s32 1, %s944_s23   ;;  %s137_s26 = sadd.s32 1, %s940_s22 }
   0x8   : > { %s134_s27 = ssub.s32 %s944_s23, %s1004_s25  ;;  %p147_p0 = scmp.ne.s32.totalorder %s940_s22, %s936_s21 }
   0x9   : > { %p135_p1 = scmp.eq.s32.totalorder %s134_s27, 0  ;;  %p148_p2 = scmp.eq.s32.totalorder %s730_s4, 1 }
   0xa   : > { %p153_p3 = scmp.ne.s32.totalorder %s936_s21, %s932_s20  ;;  %p154_p4 = scmp.eq.s32.totalorder %s731_s24, 1 }
   0xb   : > { %s1014_s28 = scalar_select %p135_p1, %s940_s22, %s137_s26  }
   0xc   : > { %p1016_p5 = por %p148_p2, %p147_p0  ;;  %p1020_p6 = por %p154_p4, %p153_p3 }
   0xd   : > { %p734_p7 = scmp.ge.s32.totalorder %s944_s23, 1  ;;  %p193_p8 = scmp.lt.s32.totalorder %s944_s23, 3 }
   0xf   : > { %p194_p9 = pnand %p734_p7, %p193_p8 }
  0x10   : > { %s1032_s10 = sshll.u32 (!%p194_p9), %s730_s4, 4  ;;  %s218_s6 = sand.u32 (!%p194_p9), 1, %s936_s21  }
  0x11   : > { %197 = sbr.rel (%p194_p9) target bundleno = 494 (0x1ee), region = 40  ;;  %p221_p10 = scmp.lt.s32.totalorder (!%p194_p9), %s1032_s10, 31 }
  0x12   : > { %s219_s7 = scalar_lea.vmem (!%p194_p9), [#allocation3], %s218_s6  ;;  %s1204_s12 = scalar_lea.hbm (!%p194_p9), %s1246_s5, %s1032_s10 }
  0x13   : > { %s676_s8 = sshll.u32 (!%p194_p9), %s219_s7, 4  ;;  %s664_s13 = scalar_lea.sflag (!%p194_p9), [#allocation4], %s218_s6  ;;  %s677_s8 = int_to_ptr.vmem [resolvable:$true] %s676_s8 }
  0x14   : > { %s947_s15 = smov (!%p194_p9), [#allocation3]  }
  0x15   : > { %s888_s16 = sshll.u32 (!%p194_p9), %s947_s15, 4  ;;  %s889_s16 = int_to_ptr.vmem [resolvable:$false] %s888_s16 }
  0x16   : > { %v848_v1 = vld [vmem:[%s1242_s1 + $0x18] sm:$0xff]   ;;  %vm286_vm0 = vcmask 916480   ;;  %v849_v2 = vld [vmem:[%s1242_s1 + $0x10] sm:$0xff]   ;;  %s222_s11 = scalar_select %p221_p10, %s1032_s10, 31  ;;  %v850_v5 = vld [vmem:[%s1242_s1 + $0x8] sm:$0xff]   ;;  %v946_v33 = vmov 0  }
  0x17   : > { %798 = vmatprep.subr.msk.bf16.mxu0 %vm286_vm0, %v848_v1  ;;  %v321_v3 = vsel %vm286_vm0, %v848_v1, 0  ;;  %799 = vmatprep.subr.msk.bf16.mxu1 %vm286_vm0, %v848_v1  ;;  %v318_v4 = vsel %vm286_vm0, %v849_v2, 0  ;;  %v315_v12 = vsel %vm286_vm0, %v850_v5, 0  ;;  %v851_v13 = vld [vmem:[%s1242_s1] sm:$0xff]   ;;  %vm459_vm1 = vcmask 523264   ;;  %p891_p0 = scmp.lt.s32.totalorder %s677_s8, %s889_s16 }
  0x18   : > { %767 = vmatpush3.bf16.xpose.msra.mxu0 %v321_v3  ;;  %794 = vmatpush3.bf16.xpose.msra.mxu1 %v321_v3  ;;  %s736_s14 = sshll.u32 %s222_s11, 3  ;;  %v312_v14 = vsel %vm286_vm0, %v851_v13, 0  ;;  %v1086_v34 = vld [vmem:[%s1244_s3] ss:$0 sm:$0xff]  ;;  %vm561_vm2 = vcmask 130112   ;;  %vm568_vm3 = vcmask 195712  }
  0x19   : > { %800 = vmatprep.subr.msk.bf16.mxu0 %vm286_vm0, %v849_v2  ;;  %801 = vmatprep.subr.msk.bf16.mxu1 %vm286_vm0, %v849_v2  ;;  %s1048_s17 = scalar_lea.vmem %s1241_s0, %s736_s14  ;;  %v1099_v54 = vld [vmem:[%s1243_s2] ss:$0 sm:$0xff]  ;;  %vm575_vm4 = vcmask 261312   ;;  %vm582_vm5 = vcmask 326912   ;;  %vm589_vm6 = vcmask 392512   ;;  %vm596_vm7 = vcmask 458112  }
  0x1a   : > { %v227_v6 = vld [vmem:[%s1048_s17] sm:$0xff]  ;;  %v228_v7 = vld [vmem:[%s1048_s17 + $0x8] sm:$0xff]  ;;  %v229_v15 = vld [vmem:[%s1048_s17 + $0x10] sm:$0xff]  ;;  %846 = vset.pattern.permute.xlu1 %v946_v33  ;;  %847 = vset.pattern.permute.xlu0 %v946_v33  ;;  %vm603_vm8 = vcmask 523712   ;;  %vm610_vm9 = vcmask 589312   ;;  %vm617_vm10 = vcmask 654912  }
  0x1b   : > { %v243_v8 = vpack.c.bf16 %v228_v7, %v227_v6  ;;  %v235_v9 = vld [vmem:[%s1048_s17 + $0x40] sm:$0xff]  ;;  %v236_v10 = vld [vmem:[%s1048_s17 + $0x48] sm:$0xff]  ;;  %v230_v16 = vld [vmem:[%s1048_s17 + $0x18] sm:$0xff]  ;;  %vm624_vm11 = vcmask 720512   ;;  %vm631_vm12 = vcmask 786112   ;;  %vm638_vm13 = vcmask 851712  }
  0x1c   : > { %v247_v11 = vpack.c.bf16 %v236_v10, %v235_v9  ;;  %v231_v17 = vld [vmem:[%s1048_s17 + $0x20] sm:$0xff]  ;;  %v237_v18 = vld [vmem:[%s1048_s17 + $0x50] sm:$0xff]  ;;  %v238_v19 = vld [vmem:[%s1048_s17 + $0x58] sm:$0xff]  ;;  %v244_v23 = vpack.c.bf16 %v230_v16, %v229_v15  ;;  %vm645_vm14 = vcmask 917312   ;;  %vm652_vm15 = vcmask 982912   ;;  %s884_s14 = scalar_lea.vmem %s677_s8, 16 }
  0x1d   : > { %774 = vmatprep.mubr.msk.bf16.mxu0 %vm286_vm0, %v243_v8  ;;  %v232_v20 = vld [vmem:[%s1048_s17 + $0x28] sm:$0xff]  ;;  %v239_v21 = vld [vmem:[%s1048_s17 + $0x60] sm:$0xff]  ;;  %v248_v24 = vpack.c.bf16 %v238_v19, %v237_v18  ;;  %v233_v27 = vld [vmem:[%s1048_s17 + $0x30] sm:$0xff]  ;;  %p885_p11 = scmp.ne.s32.totalorder %s677_s8, %s884_s14 }
  0x1e   : > { %782 = vmatprep.mubr.msk.bf16.mxu1 %vm286_vm0, %v247_v11  ;;  %v240_v22 = vld [vmem:[%s1048_s17 + $0x68] sm:$0xff]  ;;  %v245_v25 = vpack.c.bf16 %v232_v20, %v231_v17  ;;  %v234_v28 = vld [vmem:[%s1048_s17 + $0x38] sm:$0xff]  ;;  %v241_v29 = vld [vmem:[%s1048_s17 + $0x70] sm:$0xff] }
  0x1f   : > { %v249_v26 = vpack.c.bf16 %v240_v22, %v239_v21  ;;  %v242_v30 = vld [vmem:[%s1048_s17 + $0x78] sm:$0xff]  ;;  %v246_v31 = vpack.c.bf16 %v234_v28, %v233_v27  ;;  %p886_p12 = pnand %p885_p11, %p1016_p5  ;;  %s890_s17 = scalar_lea.vmem %s889_s16, 32 }
  0x20   : > { %769 = vmatpush3.bf16.xpose.msra.mxu0 %v318_v4  ;;  %795 = vmatpush3.bf16.xpose.msra.mxu1 %v318_v4  ;;  %v250_v32 = vpack.c.bf16 %v242_v30, %v241_v29  ;;  %p892_p1 = scmp.lt.s32.totalorder %s890_s17, %s884_s14 }
  0x21   : > { %802 = vmatprep.subr.msk.bf16.mxu0 %vm286_vm0, %v850_v5  ;;  %803 = vmatprep.subr.msk.bf16.mxu1 %vm286_vm0, %v850_v5  ;;  %p887_p13 = pneg %p886_p12 }
  0x22   : > { %p893_p2 = por %p892_p1, %p891_p0 }
  0x24   : > { %p894_p3 = pnand %p893_p2, %p887_p13 }
  0x28   : > { %771 = vmatpush3.bf16.xpose.msra.mxu0 %v315_v12  ;;  %796 = vmatpush3.bf16.xpose.msra.mxu1 %v315_v12 }
  0x29   : > { %804 = vmatprep.subr.msk.bf16.mxu0 %vm286_vm0, %v851_v13  ;;  %805 = vmatprep.subr.msk.bf16.mxu1 %vm286_vm0, %v851_v13 }
  0x30   : > { %773 = vmatpush3.bf16.xpose.msra.mxu0 %v312_v14  ;;  %797 = vmatpush3.bf16.xpose.msra.mxu1 %v312_v14 }
  0x37   : > { %775 = vmatmul.mubr.msk.bf16.vlgmr.msra.gmra.mxu0 %vm286_vm0, %v244_v23  ;;  %783 = vmatmul.mubr.msk.bf16.vlgmr.msra.gmra.mxu1 %vm286_vm0, %v248_v24 }
  0x38   : > { %778 = vmatprep.mubr.msk.bf16.mxu0 %vm286_vm0, %v245_v25  ;;  %786 = vmatprep.mubr.msk.bf16.mxu1 %vm286_vm0, %v249_v26 }
  0x3f   : > { %779 = vmatmul.mubr.msk.bf16.gmra.mxu0 %vm286_vm0, %v246_v31  ;;  %787 = vmatmul.mubr.msk.bf16.gmra.mxu1 %vm286_vm0, %v250_v32  ;;  %vm659_vm0 = vcmask 1048512  }
  0xf7   : > { %v776_v35 = vpop.f32.mrf.mxu0  ;;  %v784_v36 = vpop.f32.mrf.mxu1 }
  0xf8   : > { %v366_v37 = vadd.f32 %v776_v35, %v1086_v34  ;;  %v398_v7 = vadd.f32 %v784_v36, %v1086_v34 }
  0xf9   : > { %v357_v38 = vpop.f32.mrf.mxu0  ;;  %v389_v39 = vpop.f32.mrf.mxu1 }
  0xfa   : > { %852 = vtanh.f32 %v366_v37  ;;  %v358_v40 = vadd.f32 %v1086_v34, %v357_v38  ;;  %v390_v56 = vadd.f32 %v1086_v34, %v389_v39 }
  0xfb   : > { %v777_v41 = vpop.f32.mrf.mxu0  ;;  %v785_v42 = vpop.f32.mrf.mxu1 }
  0xfc   : > { %854 = vtanh.f32 %v358_v40  ;;  %v369_v43 = vadd.f32 %v777_v41, %v1086_v34  ;;  %v401_v44 = vadd.f32 %v785_v42, %v1086_v34 }
  0xfd   : > { %v360_v45 = vpop.f32.mrf.mxu0  ;;  %v392_v58 = vpop.f32.mrf.mxu1 }
  0xfe   : > { %856 = vtanh.f32 %v369_v43  ;;  %v361_v46 = vadd.f32 %v1086_v34, %v360_v45  ;;  %v393_v63 = vadd.f32 %v1086_v34, %v392_v58 }
  0xff   : > { %v780_v47 = vpop.f32.mrf.mxu0  ;;  %858 = vtanh.f32 %v401_v44  ;;  %v788_v1 = vpop.f32.mrf.mxu1 }
 0x100   : > { %860 = vtanh.f32 %v361_v46  ;;  %v382_v48 = vadd.f32 %v780_v47, %v1086_v34  ;;  %v414_v22 = vadd.f32 %v788_v1, %v1086_v34 }
 0x101   : > { %v373_v49 = vpop.f32.mrf.mxu0  ;;  %v405_v11 = vpop.f32.mrf.mxu1 }
 0x102   : > { %862 = vtanh.f32 %v382_v48  ;;  %v374_v50 = vadd.f32 %v1086_v34, %v373_v49  ;;  %v406_v16 = vadd.f32 %v1086_v34, %v405_v11 }
 0x103   : > { %v781_v51 = vpop.f32.mrf.mxu0  ;;  %v789_v17 = vpop.f32.mrf.mxu1 }
 0x104   : > { %864 = vtanh.f32 %v374_v50  ;;  %v385_v52 = vadd.f32 %v781_v51, %v1086_v34  ;;  %v417_v33 = vadd.f32 %v789_v17, %v1086_v34 }
 0x105   : > { %v376_v53 = vpop.f32.mrf.mxu0  ;;  %v408_v25 = vpop.f32.mrf.mxu1 }
 0x106   : > { %v377_v55 = vadd.f32 %v1086_v34, %v376_v53  ;;  %866 = vtanh.f32 %v385_v52  ;;  %v409_v29 = vadd.f32 %v1086_v34, %v408_v25  ;;  %v508_v34 = vld [vmem:[#allocation2] sm:$0x1] }
 0x107   : > { %v853_v57 = vpop.eup %852 }
 0x108   : > { %868 = vtanh.f32 %v377_v55  ;;  %v445_v59 = vmul.f32 %v853_v57, %v1099_v54 }
 0x109   : > { %v855_v60 = vpop.eup %854  ;;  %870 = vtanh.f32 %v390_v56 }
 0x10a   : > { %v466_v61 = vsel %vm459_vm1, %v445_v59, 0.0  ;;  %v443_v62 = vmul.f32 %v855_v60, %v1099_v54  ;;  %872 = vtanh.f32 %v393_v63  ;;  %v514_v60 = vlaneseq }
 0x10b   : > { %v857_v0 = vpop.eup %856  ;;  %467 = vadd.xlane.f32.xlu1 %v466_v61  ;;  %874 = vtanh.f32 %v398_v7 }
 0x10c   : > { %v859_v2 = vpop.eup %858  ;;  %v460_v3 = vsel %vm459_vm1, %v443_v62, 0.0  ;;  %v446_v4 = vmul.f32 %v857_v0, %v1099_v54  ;;  %876 = vtanh.f32 %v406_v16  ;;  %v1141_v62 = vshrl.u32 %v514_v60, 7 }
 0x10d   : > { %v861_v5 = vpop.eup %860  ;;  %461 = vadd.xlane.f32.xlu0 %v460_v3  ;;  %v454_v6 = vmul.f32 %v859_v2, %v1099_v54  ;;  %878 = vtanh.f32 %v414_v22  ;;  %v1144_v1 = vand.u32 127, %v514_v60 }
 0x10e   : > { %v469_v8 = vsel %vm459_vm1, %v446_v4, 0.0  ;;  %v444_v9 = vmul.f32 %v861_v5, %v1099_v54  ;;  %880 = vtanh.f32 %v409_v29  ;;  %v516_v0 = vsub.s32 0, %v1141_v62 }
 0x10f   : > { %v863_v10 = vpop.eup %862  ;;  %470 = vadd.xlane.f32.xlu1 %v469_v8  ;;  %v493_v12 = vsel %vm459_vm1, %v454_v6, 0.0  ;;  %882 = vtanh.f32 %v417_v33  ;;  %v556_v4 = vadd.s32 4294967288, %v1144_v1  ;;  %v563_v5 = vadd.s32 4294967280, %v1144_v1 }
 0x110   : > { %v463_v13 = vsel %vm459_vm1, %v444_v9, 0.0  ;;  %v449_v14 = vmul.f32 %v863_v10, %v1099_v54  ;;  %v554_v8 = vsub.s32 %v1144_v1, %v1141_v62  ;;  %v577_v17 = vadd.s32 4294967264, %v1144_v1 }
 0x111   : > { %v865_v15 = vpop.eup %864  ;;  %464 = vadd.xlane.f32.xlu0 %v463_v13  ;;  %v559_v9 = vsub.s32 %v556_v4, %v1141_v62  ;;  %v584_v22 = vadd.s32 4294967256, %v1144_v1  ;;  %v598_v33 = vadd.s32 4294967240, %v1144_v1  ;;  %v640_v60 = vadd.s32 4294967192, %v1144_v1 }
 0x112   : > { %v478_v19 = vsel %vm459_vm1, %v449_v14, 0.0  ;;  %v447_v20 = vmul.f32 %v865_v15, %v1099_v54  ;;  %v570_v15 = vadd.s32 4294967272, %v1144_v1  ;;  %v580_v25 = vsub.s32 %v577_v17, %v1141_v62 }
 0x113   : > { %v867_v18 = vpop.eup %866 }
 0x114   : > { %v472_v27 = vsel %vm459_vm1, %v447_v20, 0.0  ;;  %v450_v28 = vmul.f32 %v867_v18, %v1099_v54 }
 0x115   : > { %v869_v21 = vpop.eup %868  ;;  %479 = vadd.xlane.f32.xlu0 %v478_v19 }
 0x116   : > { %v448_v23 = vmul.f32 %v869_v21, %v1099_v54  ;;  %v871_v24 = vpop.eup %870  ;;  %v481_v32 = vsel %vm459_vm1, %v450_v28, 0.0  ;;  %v573_v21 = vsub.s32 %v570_v15, %v1141_v62 }
 0x117   : > { %v451_v30 = vmul.f32 %v871_v24, %v1099_v54  ;;  %v873_v31 = vpop.eup %872 }
 0x118   : > { %v475_v26 = vsel %vm459_vm1, %v448_v23, 0.0  ;;  %v452_v36 = vmul.f32 %v873_v31, %v1099_v54  ;;  %v875_v37 = vpop.eup %874  ;;  %v587_v31 = vsub.s32 %v584_v22, %v1141_v62 }
 0x119   : > { %476 = vadd.xlane.f32.xlu1 %v475_v26  ;;  %473 = vadd.xlane.f32.xlu0 %v472_v27  ;;  %v484_v35 = vsel %vm459_vm1, %v451_v30, 0.0  ;;  %v453_v39 = vmul.f32 %v875_v37, %v1099_v54  ;;  %v877_v40 = vpop.eup %876  ;;  %v591_v27 = vadd.s32 4294967248, %v1144_v1 }
 0x11a   : > { %v487_v38 = vsel %vm459_vm1, %v452_v36, 0.0  ;;  %v455_v42 = vmul.f32 %v877_v40, %v1099_v54  ;;  %v879_v43 = vpop.eup %878 }
 0x11b   : > { %v490_v41 = vsel %vm459_vm1, %v453_v39, 0.0  ;;  %v457_v45 = vmul.f32 %v879_v43, %v1099_v54  ;;  %v881_v46 = vpop.eup %880  ;;  %v594_v37 = vsub.s32 %v591_v27, %v1141_v62  ;;  %v605_v39 = vadd.s32 4294967232, %v1144_v1 }
 0x11c   : > { %v496_v44 = vsel %vm459_vm1, %v455_v42, 0.0  ;;  %v456_v48 = vmul.f32 %v881_v46, %v1099_v54  ;;  %v883_v49 = vpop.eup %882  ;;  %v601_v42 = vsub.s32 %v598_v33, %v1141_v62 }
 0x11d   : > { %482 = vadd.xlane.f32.xlu0 %v481_v32  ;;  %v502_v47 = vsel %vm459_vm1, %v457_v45, 0.0  ;;  %v458_v51 = vmul.f32 %v883_v49, %v1099_v54  ;;  %v608_v45 = vsub.s32 %v605_v39, %v1141_v62 }
 0x11e   : > { %v499_v50 = vsel %vm459_vm1, %v456_v48, 0.0  ;;  %v619_v48 = vadd.s32 4294967216, %v1144_v1 }
 0x11f   : > { %v505_v52 = vsel %vm459_vm1, %v458_v51, 0.0 }
 0x121   : > { %485 = vadd.xlane.f32.xlu0 %v484_v35 }
 0x125   : > { %488 = vadd.xlane.f32.xlu0 %v487_v38 }
 0x129   : > { %491 = vadd.xlane.f32.xlu0 %v490_v41 }
 0x12a   : > { %511 = vperm.xlu1 %846, %v508_v34  }
 0x12d   : > { %497 = vadd.xlane.f32.xlu0 %v496_v44  ;;  %v612_v44 = vadd.s32 4294967224, %v1144_v1 }
 0x131   : > { %503 = vadd.xlane.f32.xlu0 %v502_v47 }
 0x135   : > { %500 = vadd.xlane.f32.xlu0 %v499_v50  ;;  %v615_v50 = vsub.s32 %v612_v44, %v1141_v62 }
 0x139   : > { %506 = vadd.xlane.f32.xlu0 %v505_v52 }
 0x14e   : > { %494 = vadd.xlane.f32.xlu1 %v493_v12  ;;  %v566_v12 = vsub.s32 %v563_v5, %v1141_v62 }
 0x194   : > { %v468_v56 = vpop.xlane.xlu1 %467 }
 0x196   : > { %v462_v53 = vpop.xlane.xlu0 %461 }
 0x198   : > { %v471_v58 = vpop.xlane.xlu1 %470 }
 0x19a   : > { %v465_v55 = vpop.xlane.xlu0 %464 }
 0x19e   : > { %v480_v57 = vpop.xlane.xlu0 %479 }
 0x1a2   : > { %v474_v59 = vpop.xlane.xlu0 %473  ;;  %v477_v61 = vpop.xlane.xlu1 %476 }
 0x1a6   : > { %v483_v63 = vpop.xlane.xlu0 %482  ;;  %v512_v54 = vpop.permute.xlu1 %511 }
 0x1a7   : > { %v1146_v3 = vrot.slane %v512_v54, %v516_v0  ;;  %v654_v54 = vadd.s32 4294967176, %v1144_v1 }
 0x1a9   : > { %v518_v6 = vadd.f32 %v1146_v3, %v462_v53  ;;  %v519_v7 = vadd.f32 %v1146_v3, %v465_v55  ;;  %v520_v11 = vadd.f32 %v1146_v3, %v468_v56  ;;  %v521_v19 = vadd.f32 %v1146_v3, %v471_v58 }
 0x1aa   : > { %v486_v2 = vpop.xlane.xlu0 %485  ;;  %v522_v23 = vadd.f32 %v1146_v3, %v474_v59  ;;  %v523_v29 = vadd.f32 %v1146_v3, %v477_v61  ;;  %v524_v35 = vadd.f32 %v1146_v3, %v480_v57  ;;  %v525_v43 = vadd.f32 %v1146_v3, %v483_v63 }
 0x1ab   : > { %v555_v13 = vrot.slane %v518_v6, %v554_v8  ;;  %v560_v14 = vrot.slane %v519_v7, %v559_v9  ;;  %v567_v16 = vrot.slane %v520_v11, %v566_v12  ;;  %v574_v26 = vrot.slane %v521_v19, %v573_v21 }
 0x1ac   : > { %v581_v32 = vrot.slane %v522_v23, %v580_v25  ;;  %v588_v38 = vrot.slane %v523_v29, %v587_v31  ;;  %v595_v34 = vrot.slane %v524_v35, %v594_v37  ;;  %v526_v47 = vadd.f32 %v1146_v3, %v486_v2 }
 0x1ad   : > { %v562_v20 = vsel %vm561_vm2, %v560_v14, %v555_v13  ;;  %v602_v49 = vrot.slane %v525_v43, %v601_v42  ;;  %v626_v55 = vadd.s32 4294967208, %v1144_v1  ;;  %v622_v57 = vsub.s32 %v619_v48, %v1141_v62 }
 0x1ae   : > { %v489_v10 = vpop.xlane.xlu0 %488  ;;  %v569_v24 = vsel %vm568_vm3, %v567_v16, %v562_v20  ;;  %v609_v56 = vrot.slane %v526_v47, %v608_v45  ;;  %v633_v59 = vadd.s32 4294967200, %v1144_v1  ;;  %v647_v63 = vadd.s32 4294967184, %v1144_v1 }
 0x1af   : > { %v576_v30 = vsel %vm575_vm4, %v574_v26, %v569_v24  ;;  %v527_v53 = vadd.f32 %v1146_v3, %v489_v10  ;;  %v629_v2 = vsub.s32 %v626_v55, %v1141_v62  ;;  %v643_v10 = vsub.s32 %v640_v60, %v1141_v62 }
 0x1b0   : > { %v583_v36 = vsel %vm582_vm5, %v581_v32, %v576_v30  ;;  %v636_v5 = vsub.s32 %v633_v59, %v1141_v62  ;;  %v650_v1 = vsub.s32 %v647_v63, %v1141_v62  ;;  %v657_v14 = vsub.s32 %v654_v54, %v1141_v62 }
 0x1b1   : > { %v590_v41 = vsel %vm589_vm6, %v588_v38, %v583_v36  ;;  %v616_v0 = vrot.slane %v527_v53, %v615_v50 }
 0x1b2   : > { %v492_v18 = vpop.xlane.xlu0 %491  ;;  %v597_v46 = vsel %vm596_vm7, %v595_v34, %v590_v41 }
 0x1b3   : > { %v604_v52 = vsel %vm603_vm8, %v602_v49, %v597_v46  ;;  %v528_v58 = vadd.f32 %v1146_v3, %v492_v18 }
 0x1b4   : > { %v611_v61 = vsel %vm610_vm9, %v609_v56, %v604_v52 }
 0x1b5   : > { %v623_v4 = vrot.slane %v528_v58, %v622_v57  ;;  %v618_v9 = vsel %vm617_vm10, %v616_v0, %v611_v61 }
 0x1b6   : > { %v498_v28 = vpop.xlane.xlu0 %497 }
 0x1b7   : > { %v530_v6 = vadd.f32 %v1146_v3, %v498_v28  ;;  %v625_v17 = vsel %vm624_vm11, %v623_v4, %v618_v9 }
 0x1b9   : > { %v637_v18 = vrot.slane %v530_v6, %v636_v5 }
 0x1ba   : > { %v504_v40 = vpop.xlane.xlu0 %503 }
 0x1bb   : > { %v532_v13 = vadd.f32 %v1146_v3, %v504_v40 }
 0x1bd   : > { %v651_v21 = vrot.slane %v532_v13, %v650_v1 }
 0x1be   : > { %v501_v51 = vpop.xlane.xlu0 %500 }
 0x1bf   : > { %v531_v11 = vadd.f32 %v1146_v3, %v501_v51 }
 0x1c1   : > { %v644_v19 = vrot.slane %v531_v11, %v643_v10 }
 0x1c2   : > { %v507_v7 = vpop.xlane.xlu0 %506 }
 0x1c3   : > { %v533_v15 = vadd.f32 %v1146_v3, %v507_v7 }
 0x1c5   : > { %v658_v62 = vrot.slane %v533_v15, %v657_v14 }
 0x1d7   : > { %v495_v8 = vpop.xlane.xlu1 %494 }
 0x1d8   : > { %v529_v12 = vadd.f32 %v1146_v3, %v495_v8 }
 0x1da   : > { %v630_v16 = vrot.slane %v529_v12, %v629_v2 }
 0x1dc   : > { %v632_v20 = vsel %vm631_vm12, %v630_v16, %v625_v17 }
 0x1dd   : > { %v639_v22 = vsel %vm638_vm13, %v637_v18, %v632_v20 }
 0x1de   : > { %v646_v3 = vsel %vm645_vm14, %v644_v19, %v639_v22 }
 0x1df   : > { %v653_v23 = vsel %vm652_vm15, %v651_v21, %v646_v3 }
 0x1e0   : > { %v660_v24 = vsel %vm659_vm0, %v658_v62, %v653_v23 }
 0x1e1   : > { %662 = vst [vmem:[%s219_s7] sm:$0x1] %v660_v24 }
 0x1e2   : > { %897 = shalt.err (!%p894_p3)
}
 0x1e3   : > { %s898_s10 = scalar_lea.hbm %s1204_s12, 16  ;;  %s902_s4 = scalar_lea.hbm %s1246_s5, 32 }
 0x1e4   : > { %p899_p4 = scmp.ne.s32.totalorder %s1204_s12, %s898_s10  ;;  %p903_p9 = scmp.lt.s32.totalorder %s1204_s12, %s1246_s5 }
 0x1e5   : > { %p904_p10 = scmp.lt.s32.totalorder %s902_s4, %s898_s10 }
 0x1e6   : > { %p900_p7 = pnand %p899_p4, %p1016_p5 }
 0x1e7   : > { %p905_p11 = por %p904_p10, %p903_p9 }
 0x1e8   : > { %p901_p8 = pneg %p900_p7 }
 0x1ea   : > { %p906_p12 = pnand %p905_p11, %p901_p8 }
 0x1ec   : > { %909 = shalt.err (!%p906_p12)
}
 0x1ed   : > { %806 = dma.vmem_to_hbm [thread:$0]  (%p1016_p5), %s677_s8, 16, %s1204_s12, %s664_s13  }
 0x1ee PF: > { %p812_p13 = scmp.ge.s32.totalorder %s944_s23, 2  ;;  %s688_s27 = sand.u32 1, %s932_s20  }
 0x1ef   : > { %s689_s6 = scalar_lea.sflag [#allocation4], %s688_s27 }
 0x1f0   : > { %p809_p0 = pnand %p812_p13, %p1020_p6 }
 0x1f2   : > { %p810_p1 = pneg %p809_p0 }
 0x1f4   : > { %927 = dma.done.wait (%p810_p1), %s689_s6, 16  }
 0x1f5   : > { %929 = vsyncadd (%p810_p1), %s689_s6, 4294967280  ;;  %p17_p2 = scmp.ge.s32.totalorder %s1004_s25, 4   ;;  %s1249_s20 = smov %s936_s21 }
 0x1f6   : > { %s1250_s21 = smov %s940_s22  ;;  %s1251_s22 = smov %s1014_s28 }
 0x1f7   : > { %s1252_s23 = smov %s1004_s25  ;;  %19 = sbr.rel (!%p17_p2) target bundleno = 6 (0x6), region = 75 }
 0x1fc   :  { %693 = vsyncpa [#allocation4], 1 }
 0x1fd   :  { %695 = vsyncpa [#allocation4 + $0x1], 1 }

</bundles_post_ra>
